<compile_context>
chip_gen: v6e
topology: v6e:2x2x1
jax: 0.10.0
libtpu: 0.0.40
codegen_flags: <defaults>
</compile_context>

<pallas_src>
import functools
import math

import jax
import jax.numpy as jnp
from jax.experimental import pallas as pl
from jax.experimental.pallas import tpu as pltpu


OUT_W = 128  # lane-dense output slab width: cols [0:A] = logits, col A = value


def _round_up(n, m):
    return ((n + m - 1) // m) * m


def _orthogonal(key, shape, gain):
    """Deterministic orthogonal init (analog of nn.init.orthogonal_)."""
    rows, cols = shape
    a = jax.random.normal(key, (max(rows, cols), min(rows, cols)), jnp.float32)
    q, r = jnp.linalg.qr(a)
    d = jnp.diag(r)
    q = q * jnp.where(d >= 0.0, 1.0, -1.0)   # sign-fix (avoid 0 from sign())
    if rows < cols:
        q = q.T
    return (gain * q[:rows, :cols]).astype(jnp.float32)


def actor_critic_kernel(x_ref,
                        wh_ref, bh_ref,          # lin_hidden
                        wheads_ref, bheads_ref,  # fused [mu-hidden | critic-hidden]
                        wout_ref, bout_ref,      # fused blockdiag(Wa, Wv) -> 128 lanes
                        out_ref):
    bf = jnp.bfloat16

    # lin_hidden: ReLU(x @ Wh + bh)   (bf16 MXU operands, f32 accumulate)
    feat = jnp.dot(x_ref[...].astype(bf), wh_ref[...],
                   preferred_element_type=jnp.float32) + bh_ref[...]
    feat = jnp.maximum(feat, 0.0)

    # fused actor/critic hidden layers: ReLU(feat @ [Wah | Wvh] + [bah | bvh])
    heads = jnp.dot(feat.astype(bf), wheads_ref[...],
                    preferred_element_type=jnp.float32) + bheads_ref[...]
    heads = jnp.maximum(heads, 0.0)

    # fused output heads: [ah | vh] @ blockdiag(Wa, Wv) zero-padded to 128 lanes
    # -> single unmasked lane-dense store / single output DMA.
    out_ref[...] = jnp.dot(heads.astype(bf), wout_ref[...],
                           preferred_element_type=jnp.float32) + bout_ref[...]


@functools.partial(jax.jit, static_argnames=("action_dim",))
def actor_critic_forward(x, params, action_dim):
    """Returns (logits, value, hidden_out=None). logits parameterize the
    Categorical dist; value is squeezed on the last axis (glue outside kernel)."""
    B, obs_dim = x.shape
    H = params["wh"].shape[1]
    H2 = params["w_heads"].shape[1]

    # Batch tiling: single block at small B; grid + resident weights at large B.
    TB = 512 if B >= 512 else _round_up(max(B, 8), 8)
    padded_B = _round_up(B, TB)
    if padded_B != B:
        x = jnp.pad(x, ((0, padded_B - B), (0, 0)))
    grid = (padded_B // TB,)

    flops = 2 * padded_B * (obs_dim * H + H * H2 + H2 * OUT_W)
    bytes_accessed = (
        padded_B * obs_dim * 4
        + sum(int(v.size) * v.dtype.itemsize for v in params.values())
        + padded_B * OUT_W * 4
    )

    out = pl.pallas_call(
        actor_critic_kernel,
        out_shape=jax.ShapeDtypeStruct((padded_B, OUT_W), jnp.float32),
        grid_spec=pltpu.PrefetchScalarGridSpec(
            num_scalar_prefetch=0,
            grid=grid,
            in_specs=[
                pl.BlockSpec((TB, obs_dim), lambda i: (i, 0)),
                # weights/biases: same block every iteration => resident in VMEM
                pl.BlockSpec(params["wh"].shape, lambda i: (0, 0)),
                pl.BlockSpec(params["bh"].shape, lambda i: (0, 0)),
                pl.BlockSpec(params["w_heads"].shape, lambda i: (0, 0)),
                pl.BlockSpec(params["b_heads"].shape, lambda i: (0, 0)),
                pl.BlockSpec(params["w_out"].shape, lambda i: (0, 0)),
                pl.BlockSpec(params["b_out"].shape, lambda i: (0, 0)),
            ],
            out_specs=pl.BlockSpec((TB, OUT_W), lambda i: (i, 0)),
        ),
        compiler_params=pltpu.CompilerParams(
            dimension_semantics=("parallel",)),
        cost_estimate=pl.CostEstimate(
            flops=flops, transcendentals=0, bytes_accessed=bytes_accessed),
    )(
        x,
        params["wh"], params["bh"],
        params["w_heads"], params["b_heads"],
        params["w_out"], params["b_out"],
    )

    logits = out[:B, :action_dim]
    value = out[:B, action_dim]
    return logits, value, None


def make_params(key, obs_dim, hidden, action_dim, out_width=OUT_W):
    assert action_dim + 1 <= out_width
    ks = jax.random.split(key, 5)
    sqrt2 = math.sqrt(2.0)
    sqrt001 = math.sqrt(0.01)

    # Per-layer orthogonal weights (stored as (in_features, out_features)).
    wh = _orthogonal(ks[0], (obs_dim, hidden), sqrt2)       # lin_hidden
    wah = _orthogonal(ks[1], (hidden, hidden), sqrt2)       # mu hidden
    wvh = _orthogonal(ks[2], (hidden, hidden), sqrt2)       # critic hidden
    wa = _orthogonal(ks[3], (hidden, action_dim), sqrt001)  # mu out (logits)
    wv = _orthogonal(ks[4], (hidden, 1), 1.0)               # critic out

    # Fuse the two hidden heads along the output dim: (H, 2H).
    w_heads = jnp.concatenate([wah, wvh], axis=1)

    # Fuse the two output heads into a zero-padded block-diagonal (2H, 128):
    #   cols [0:A]   <- Wa  (fed by ah = heads[:, :H])
    #   col  A       <- Wv  (fed by vh = heads[:, H:])
    w_out = jnp.zeros((2 * hidden, out_width), jnp.float32)
    w_out = w_out.at[:hidden, :action_dim].set(wa)
    w_out = w_out.at[hidden:, action_dim].set(wv[:, 0])

    return {
        # matmul weights stored bf16 (f32 accumulation in-kernel)
        "wh": wh.astype(jnp.bfloat16),
        "bh": jnp.zeros((1, hidden), jnp.float32),
        "w_heads": w_heads.astype(jnp.bfloat16),
        "b_heads": jnp.zeros((1, 2 * hidden), jnp.float32),
        "w_out": w_out.astype(jnp.bfloat16),
        "b_out": jnp.zeros((1, out_width), jnp.float32),
    }


def _reference(x, p, action_dim):
    """Mirrors the kernel math (bf16 operands, f32 accumulate) for a tight check."""
    bf = jnp.bfloat16
    feat = jnp.maximum(
        jnp.dot(x.astype(bf), p["wh"], preferred_element_type=jnp.float32)
        + p["bh"], 0.0)
    heads = jnp.maximum(
        jnp.dot(feat.astype(bf), p["w_heads"], preferred_element_type=jnp.float32)
        + p["b_heads"], 0.0)
    out = jnp.dot(heads.astype(bf), p["w_out"],
                  preferred_element_type=jnp.float32) + p["b_out"]
    return out[:, :action_dim], out[:, action_dim]


if __name__ == "__main__":
    key = jax.random.PRNGKey(0)
    k_x, k_p = jax.random.split(key)

    B, OBS, H, A = 8, 16, 32, 4   # small shapes implied by the module
    x = jax.random.normal(k_x, (B, OBS), jnp.float32)
    params = make_params(k_p, OBS, H, A)

    logits, value, hidden_out = actor_critic_forward(x, params, A)
    jax.block_until_ready((logits, value))

    ref_logits, ref_value = _reference(x, params, A)
    assert logits.shape == (B, A) and value.shape == (B,)
    assert jnp.allclose(logits, ref_logits, atol=1e-3, rtol=1e-3)
    assert jnp.allclose(value, ref_value, atol=1e-3, rtol=1e-3)
    assert hidden_out is None

    print("KERNEL_OK")
</pallas_src>

<mosaic_0001>
module attributes {stable_mosaic.version = 11 : i64} {
  func.func @actor_critic_kernel(%arg0: i32, %arg1: memref<8x16xf32, #tpu.memory_space<vmem>>, %arg2: memref<16x32xbf16, #tpu.memory_space<vmem>>, %arg3: memref<1x32xf32, #tpu.memory_space<vmem>>, %arg4: memref<32x64xbf16, #tpu.memory_space<vmem>>, %arg5: memref<1x64xf32, #tpu.memory_space<vmem>>, %arg6: memref<64x128xbf16, #tpu.memory_space<vmem>>, %arg7: memref<1x128xf32, #tpu.memory_space<vmem>>, %arg8: memref<8x128xf32, #tpu.memory_space<vmem>>) attributes {dimension_semantics = [#tpu.dimension_semantics<parallel>], iteration_bounds = array<i64: 1>, scalar_prefetch = 0 : i64, scratch_operands = 0 : i64, tpu.core_type = #tpu.core_type<tc>, window_params = [{transform_indices = @transform_0, window_bounds = array<i64: 8, 16>}, {pipeline_mode = #tpu.pipeline_mode<synchronous>, transform_indices = @transform_1, window_bounds = array<i64: 16, 32>}, {pipeline_mode = #tpu.pipeline_mode<synchronous>, transform_indices = @transform_2, window_bounds = array<i64: 1, 32>}, {pipeline_mode = #tpu.pipeline_mode<synchronous>, transform_indices = @transform_3, window_bounds = array<i64: 32, 64>}, {pipeline_mode = #tpu.pipeline_mode<synchronous>, transform_indices = @transform_4, window_bounds = array<i64: 1, 64>}, {pipeline_mode = #tpu.pipeline_mode<synchronous>, transform_indices = @transform_5, window_bounds = array<i64: 64, 128>}, {pipeline_mode = #tpu.pipeline_mode<synchronous>, transform_indices = @transform_6, window_bounds = array<i64: 1, 128>}, {transform_indices = @transform_7, window_bounds = array<i64: 8, 128>}]} {
    %c0 = arith.constant 0 : index
    %c0_0 = arith.constant 0 : index
    %0 = vector.load %arg1[%c0, %c0_0] : memref<8x16xf32, #tpu.memory_space<vmem>>, vector<8x16xf32>
    %1 = arith.truncf %0 : vector<8x16xf32> to vector<8x16xbf16>
    %c0_1 = arith.constant 0 : index
    %c0_2 = arith.constant 0 : index
    %2 = vector.load %arg2[%c0_1, %c0_2] : memref<16x32xbf16, #tpu.memory_space<vmem>>, vector<16x32xbf16>
    %cst = arith.constant dense<0.000000e+00> : vector<8x32xf32>
    %3 = tpu.matmul %1, %2, %cst {dimension_numbers = #tpu.dot_dimension_numbers<[1], [0], [0], [1], [0, 0, 1, 1], [], []>} : vector<8x16xbf16>, vector<16x32xbf16>, vector<8x32xf32> -> vector<8x32xf32>
    %c0_3 = arith.constant 0 : index
    %c0_4 = arith.constant 0 : index
    %4 = vector.load %arg3[%c0_3, %c0_4] : memref<1x32xf32, #tpu.memory_space<vmem>>, vector<1x32xf32>
    %5 = vector.broadcast %4 : vector<1x32xf32> to vector<8x32xf32>
    %6 = arith.addf %3, %5 : vector<8x32xf32>
    %cst_5 = arith.constant 0.000000e+00 : f32
    %7 = vector.broadcast %cst_5 : f32 to vector<8x32xf32>
    %8 = arith.maximumf %6, %7 : vector<8x32xf32>
    %9 = arith.truncf %8 : vector<8x32xf32> to vector<8x32xbf16>
    %c0_6 = arith.constant 0 : index
    %c0_7 = arith.constant 0 : index
    %10 = vector.load %arg4[%c0_6, %c0_7] : memref<32x64xbf16, #tpu.memory_space<vmem>>, vector<32x64xbf16>
    %cst_8 = arith.constant dense<0.000000e+00> : vector<8x64xf32>
    %11 = tpu.matmul %9, %10, %cst_8 {dimension_numbers = #tpu.dot_dimension_numbers<[1], [0], [0], [1], [0, 0, 1, 1], [], []>} : vector<8x32xbf16>, vector<32x64xbf16>, vector<8x64xf32> -> vector<8x64xf32>
    %c0_9 = arith.constant 0 : index
    %c0_10 = arith.constant 0 : index
    %12 = vector.load %arg5[%c0_9, %c0_10] : memref<1x64xf32, #tpu.memory_space<vmem>>, vector<1x64xf32>
    %13 = vector.broadcast %12 : vector<1x64xf32> to vector<8x64xf32>
    %14 = arith.addf %11, %13 : vector<8x64xf32>
    %cst_11 = arith.constant 0.000000e+00 : f32
    %15 = vector.broadcast %cst_11 : f32 to vector<8x64xf32>
    %16 = arith.maximumf %14, %15 : vector<8x64xf32>
    %17 = arith.truncf %16 : vector<8x64xf32> to vector<8x64xbf16>
    %c0_12 = arith.constant 0 : index
    %c0_13 = arith.constant 0 : index
    %18 = vector.load %arg6[%c0_12, %c0_13] : memref<64x128xbf16, #tpu.memory_space<vmem>>, vector<64x128xbf16>
    %cst_14 = arith.constant dense<0.000000e+00> : vector<8x128xf32>
    %19 = tpu.matmul %17, %18, %cst_14 {dimension_numbers = #tpu.dot_dimension_numbers<[1], [0], [0], [1], [0, 0, 1, 1], [], []>} : vector<8x64xbf16>, vector<64x128xbf16>, vector<8x128xf32> -> vector<8x128xf32>
    %c0_15 = arith.constant 0 : index
    %c0_16 = arith.constant 0 : index
    %20 = vector.load %arg7[%c0_15, %c0_16] : memref<1x128xf32, #tpu.memory_space<vmem>>, vector<1x128xf32>
    %21 = vector.broadcast %20 : vector<1x128xf32> to vector<8x128xf32>
    %22 = arith.addf %19, %21 : vector<8x128xf32>
    %c0_17 = arith.constant 0 : index
    %c0_18 = arith.constant 0 : index
    %23 = vector.load %arg8[%c0_17, %c0_18] : memref<8x128xf32, #tpu.memory_space<vmem>>, vector<8x128xf32>
    tpu.vector_store %arg8[%c0_17, %c0_18], %22 {strides = array<i32>} : memref<8x128xf32, #tpu.memory_space<vmem>>, vector<8x128xf32>,
    return
  }
  func.func @transform_0(%arg0: i32) -> (i32, i32) {
    %c0_i32 = arith.constant 0 : i32
    %c0_i32_0 = arith.constant 0 : i32
    return %arg0, %c0_i32 : i32, i32
  }
  func.func @transform_1(%arg0: i32) -> (i32, i32) {
    %c0_i32 = arith.constant 0 : i32
    %c0_i32_0 = arith.constant 0 : i32
    %c0_i32_1 = arith.constant 0 : i32
    return %c0_i32, %c0_i32_0 : i32, i32
  }
  func.func @transform_2(%arg0: i32) -> (i32, i32) {
    %c0_i32 = arith.constant 0 : i32
    %c0_i32_0 = arith.constant 0 : i32
    %c0_i32_1 = arith.constant 0 : i32
    return %c0_i32, %c0_i32_0 : i32, i32
  }
  func.func @transform_3(%arg0: i32) -> (i32, i32) {
    %c0_i32 = arith.constant 0 : i32
    %c0_i32_0 = arith.constant 0 : i32
    %c0_i32_1 = arith.constant 0 : i32
    return %c0_i32, %c0_i32_0 : i32, i32
  }
  func.func @transform_4(%arg0: i32) -> (i32, i32) {
    %c0_i32 = arith.constant 0 : i32
    %c0_i32_0 = arith.constant 0 : i32
    %c0_i32_1 = arith.constant 0 : i32
    return %c0_i32, %c0_i32_0 : i32, i32
  }
  func.func @transform_5(%arg0: i32) -> (i32, i32) {
    %c0_i32 = arith.constant 0 : i32
    %c0_i32_0 = arith.constant 0 : i32
    %c0_i32_1 = arith.constant 0 : i32
    return %c0_i32, %c0_i32_0 : i32, i32
  }
  func.func @transform_6(%arg0: i32) -> (i32, i32) {
    %c0_i32 = arith.constant 0 : i32
    %c0_i32_0 = arith.constant 0 : i32
    %c0_i32_1 = arith.constant 0 : i32
    return %c0_i32, %c0_i32_0 : i32, i32
  }
  func.func @transform_7(%arg0: i32) -> (i32, i32) {
    %c0_i32 = arith.constant 0 : i32
    %c0_i32_0 = arith.constant 0 : i32
    return %arg0, %c0_i32 : i32, i32
  }
}

</mosaic_0001>

<bundles_post_ra>
// kernel: actor_critic_forward.1
= control target key start
LH: loop header
LB: loop body
LE: loop exit
PB: predicated region body
PF: predicated region fallthrough
CT: control target
= control target key end

     0   :  { %12 = vsyncpa [#allocation3], 0  ;;  %s529_s0 = inlined_call_operand.hbm [shape: f32[8,16], index: 0, kind: input, shape index: {}]   ;;  %s530_s1 = inlined_call_operand.vmem [shape: bf16[16,32], index: 1, kind: input, shape index: {}]   ;;  %s531_s2 = inlined_call_operand.vmem [shape: f32[1,32], index: 2, kind: input, shape index: {}]   ;;  %s532_s3 = inlined_call_operand.hbm [shape: bf16[32,64], index: 3, kind: input, shape index: {}]   ;;  %s533_s4 = inlined_call_operand.hbm [shape: f32[1,64], index: 4, kind: input, shape index: {}]   ;;  %s534_s5 = inlined_call_operand.hbm [shape: bf16[64,128], index: 5, kind: input, shape index: {}]   ;;  %s535_s6 = inlined_call_operand.vmem [shape: f32[1,128], index: 6, kind: input, shape index: {}]   ;;  %s536_s7 = inlined_call_operand.vmem [shape: f32[8,128], index: 7, kind: output, shape index: {}]  }
   0x1   :  { %13 = vsyncpa [#allocation5], 0 }
   0x2   :  { %14 = vsyncpa [#allocation8], 0  ;;  %s451_s24 = smov [#allocation4]  }
   0x3   :  { %s34_s25 = sshll.u32 %s451_s24, 4  ;;  %s35_s25 = int_to_ptr.vmem [resolvable:$true] %s34_s25 }
   0x4   :  { %s373_s26 = scalar_lea.vmem %s35_s25, 256  ;;  %p378_p1 = scmp.lt.s32.totalorder %s35_s25, %s35_s25 }
   0x5   :  { %p374_p0 = scmp.ne.s32.totalorder %s35_s25, %s373_s26  ;;  %p379_p2 = scmp.lt.s32.totalorder %s373_s26, %s373_s26 }
   0x7   :  { %p380_p3 = por %p379_p2, %p378_p1 }
   0x9   :  { %p381_p4 = pnand %p380_p3, %p374_p0 }
   0xb   :  { %384 = shalt.err (!%p381_p4)
}
   0xc   :  { %s452_s27 = smov 64   ;;  %s453_s28 = smov 4  }
   0xd   :  { %40 = dma.hbm_to_vmem [thread:$0]  %s532_s3, 256, %s35_s25, [#allocation5], %s452_s27, %s452_s27, %s453_s28  }
   0xe   :  { %s454_s8 = smov [#allocation2]   ;;  %s455_s10 = smov [#allocation6]  }
   0xf   :  { %s21_s9 = sshll.u32 %s454_s8, 4  ;;  %s47_s11 = sshll.u32 %s455_s10, 4  ;;  %s22_s9 = int_to_ptr.vmem [resolvable:$true] %s21_s9  ;;  %s48_s11 = int_to_ptr.vmem [resolvable:$true] %s47_s11 }
  0x10   :  { %s393_s12 = scalar_lea.vmem %s22_s9, 128  ;;  %p398_p6 = scmp.lt.s32.totalorder %s22_s9, %s22_s9 }
  0x11   :  { %p394_p5 = scmp.ne.s32.totalorder %s22_s9, %s393_s12  ;;  %p399_p7 = scmp.lt.s32.totalorder %s393_s12, %s393_s12 }
  0x13   :  { %p400_p8 = por %p399_p7, %p398_p6 }
  0x15   :  { %p401_p9 = pnand %p400_p8, %p394_p5 }
  0x17   :  { %404 = shalt.err (!%p401_p9)
}
  0x18   :  { %24 = dma.hbm_to_vmem [thread:$0]  %s529_s0, 128, %s22_s9, [#allocation3]  }
  0x19   :  { %s413_s15 = scalar_lea.vmem %s48_s11, 16  ;;  %s417_s3 = scalar_lea.vmem %s48_s11, 32 }
  0x1a   :  { %p414_p10 = scmp.ne.s32.totalorder %s48_s11, %s413_s15  ;;  %p418_p11 = scmp.lt.s32.totalorder %s48_s11, %s48_s11 }
  0x1b   :  { %p419_p12 = scmp.lt.s32.totalorder %s417_s3, %s413_s15 }
  0x1d   :  { %p420_p13 = por %p419_p12, %p418_p11 }
  0x1f   :  { %p421_p0 = pnand %p420_p13, %p414_p10 }
  0x21   :  { %424 = shalt.err (!%p421_p0)
}
  0x22   :  { %50 = dma.hbm_to_vmem [thread:$0]  %s533_s4, 16, %s48_s11, [#allocation5]  }
  0x23   :  { %s456_s18 = smov [#allocation7]  }
  0x24   :  { %s56_s19 = sshll.u32 %s456_s18, 4  ;;  %s57_s19 = int_to_ptr.vmem [resolvable:$true] %s56_s19 }
  0x25   :  { %s433_s20 = scalar_lea.vmem %s57_s19, 512  ;;  %p438_p2 = scmp.lt.s32.totalorder %s57_s19, %s57_s19 }
  0x26   :  { %p434_p1 = scmp.ne.s32.totalorder %s57_s19, %s433_s20  ;;  %p439_p3 = scmp.lt.s32.totalorder %s433_s20, %s433_s20 }
  0x28   :  { %p440_p4 = por %p439_p3, %p438_p2 }
  0x2a   :  { %p441_p5 = pnand %p440_p4, %p434_p1 }
  0x2c   :  { %444 = shalt.err (!%p441_p5)
}
  0x2d   :  { %62 = dma.hbm_to_vmem [thread:$0]  %s534_s5, 512, %s57_s19, [#allocation8], %s452_s27, %s452_s27, %s453_s28  }
  0x2e   :  { %445 = dma.done.wait [#allocation3], 128  }
  0x2f   :  { %446 = vsyncadd [#allocation3], 4294967168 }
  0x30   :  { %447 = dma.done.wait [#allocation5], 272  }
  0x31   :  { %448 = vsyncadd [#allocation5], 4294967024 }
  0x32   :  { %449 = dma.done.wait [#allocation8], 512  }
  0x33   :  { %450 = vsyncadd [#allocation8], 4294966784  ;;  %v457_v0 = vmov 0.0   ;;  %vm458_vm0 = vmmov 0   ;;  %v358_v1 = vld [vmem:[%s530_s1] sm:$0xff]   ;;  %vm95_vm1 = vcmask 130048  }
  0x34   :  { %324 = vmatprep.subr.bf16.mxu1 %v457_v0  ;;  %326 = vmatprep.mubr.msk.bf16.mxu1 %vm458_vm0, %v457_v0  ;;  %v78_v2 = vld [vmem:[#allocation2] sm:$0xff]  ;;  %v359_v4 = vld [vmem:[#allocation4 + $0x8] sm:$0xff]   ;;  %v360_v5 = vld [vmem:[#allocation4] sm:$0xff]   ;;  %vm164_vm2 = vcmask 261120   ;;  %vm249_vm3 = vcmask 523264  }
  0x35   :  { %338 = vmatprep.subr.bf16.mxu0 %v457_v0  ;;  %346 = vmatprep.mubr.msk.bf16.mxu0 %vm458_vm0, %v457_v0  ;;  %v79_v3 = vpack.c.bf16 %v78_v2, %v78_v2  ;;  %v361_v6 = vld [vmem:[#allocation7 + $0x18] sm:$0xff]   ;;  %v362_v7 = vld [vmem:[#allocation7 + $0x10] sm:$0xff]   ;;  %v301_v8 = vld [vmem:[%s531_s2] ss:$0 sm:$0xff] }
  0x36   :  { %325 = vmatpush3.bf16.msra.mxu1 %v358_v1  ;;  %339 = vmatpush3.bf16.msra.mxu0 %v361_v6  ;;  %v363_v16 = vld [vmem:[#allocation7 + $0x8] sm:$0xff]   ;;  %v364_v17 = vld [vmem:[#allocation7] sm:$0xff]   ;;  %v304_v18 = vld [vmem:[#allocation6] ss:$0 sm:$0xff] }
  0x37   :  { %330 = vmatprep.subr.bf16.mxu1 %v457_v0  ;;  %340 = vmatprep.subr.bf16.mxu0 %v457_v0  ;;  %v308_v26 = vld [vmem:[%s535_s6] ss:$0 sm:$0xff] }
  0x39   :  { %327 = vmatmul.mubr.msk.bf16.vlgmr.msra.gmra.mxu1 %vm95_vm1, %v79_v3 }
  0x3a   :  { %331 = vmatpush3.bf16.msra.mxu1 %v359_v4  ;;  %334 = vmatprep.mubr.msk.bf16.mxu1 %vm458_vm0, %v457_v0 }
  0x3b   :  { %332 = vmatprep.subr.bf16.mxu1 %v457_v0  ;;  %341 = vmatpush3.bf16.msra.mxu0 %v362_v7 }
  0x3c   :  { %342 = vmatprep.subr.bf16.mxu0 %v457_v0 }
  0x3e   :  { %333 = vmatpush3.bf16.msra.mxu1 %v360_v5 }
  0x3f   :  { %343 = vmatpush3.bf16.msra.mxu0 %v363_v16 }
  0x40   :  { %344 = vmatprep.subr.bf16.mxu0 %v457_v0 }
  0x43   :  { %345 = vmatpush3.bf16.msra.mxu0 %v364_v17 }
  0xf9   :  { %v133_v9 = vpop.f32.mrf.mxu1 }
  0xfa   :  { %v134_v10 = vadd.f32 %v301_v8, %v133_v9 }
  0xfb   :  { %v328_v11 = vpop.f32.mrf.mxu1 }
  0xfc   :  { %v139_v12 = vmax.f32 %v134_v10, 0.0 }
  0xfd   :  { %v136_v13 = vpop.f32.mrf.mxu1 }
  0xfe   :  { %v140_v14 = vpack.c.bf16 %v139_v12, %v139_v12 }
  0xff   :  { %v329_v15 = vpop.f32.mrf.mxu1 }
 0x100   :  { %335 = vmatmul.mubr.msk.bf16.vlgmr.msra.gmra.mxu1 %vm164_vm2, %v140_v14 }
 0x1c0   :  { %v202_v19 = vpop.f32.mrf.mxu1 }
 0x1c1   :  { %v203_v20 = vadd.f32 %v304_v18, %v202_v19 }
 0x1c2   :  { %v336_v21 = vpop.f32.mrf.mxu1 }
 0x1c3   :  { %v208_v22 = vmax.f32 %v203_v20, 0.0 }
 0x1c4   :  { %v205_v23 = vpop.f32.mrf.mxu1 }
 0x1c5   :  { %v209_v24 = vpack.c.bf16 %v208_v22, %v208_v22 }
 0x1c6   :  { %v337_v25 = vpop.f32.mrf.mxu1 }
 0x1c7   :  { %347 = vmatmul.mubr.msk.bf16.vlgmr.msra.gmra.mxu0 %vm249_vm3, %v209_v24 }
 0x287   :  { %v287_v27 = vpop.f32.mrf.mxu0 }
 0x288   :  { %v288_v28 = vadd.f32 %v308_v26, %v287_v27 }
 0x289   :  { %v348_v29 = vpop.f32.mrf.mxu0 }
 0x28a   :  { %293 = vst [vmem:[%s536_s7] sm:$0xff] %v288_v28 }
 0x28b   :  { %v290_v30 = vpop.f32.mrf.mxu0 }
 0x28d   :  { %v349_v31 = vpop.f32.mrf.mxu0 }
 0x28e   :  { %298 = vsyncpa [#allocation3], 1 }
 0x28f   :  { %299 = vsyncpa [#allocation5], 1 }
 0x290   :  { %300 = vsyncpa [#allocation8], 1 }

</bundles_post_ra>
